<compile_context>
chip_gen: v7x
topology: tpu7x:2x2x1
jax: 0.10.0
libtpu: 0.0.40
codegen_flags: <defaults>
</compile_context>

<pallas_src>
import functools

import jax
import jax.numpy as jnp
from jax.experimental import pallas as pl
from jax.experimental.pallas import tpu as pltpu

BN_EPS = 1e-5


def _round_up(n, m):
    return ((n + m - 1) // m) * m


def _fold_bn(w, b, gamma, beta, mean, var):
    """Fold eval-mode BatchNorm1d into the preceding Linear (y = x@W + b)."""
    scale = gamma * jax.lax.rsqrt(var + BN_EPS)          # (1, fout)
    return w * scale, (b - mean) * scale + beta


def _choose_tm(batch, tile_m):
    """Row-tile size: multiple of 8, <= tile_m, and (when the batch allows)
    an even number of grid steps >= 2 so v7x's two TensorCores both get work."""
    steps = pl.cdiv(batch, tile_m)
    steps = max(2, steps + (steps % 2))                  # even, at least 2
    tm = _round_up(pl.cdiv(batch, steps), 8)
    return max(8, min(tm, _round_up(tile_m, 8)))


def deepnn_kernel(x_ref,
                  w1_ref, b1_ref,
                  w2_ref, b2_ref,
                  w3_ref, b3_ref,
                  w4_ref, b4_ref,
                  out_ref):
    # Dropout(0.3) is identity in eval mode; BN is pre-folded into W/b.
    # TODO(synk): train-mode Dropout / batch-stats BN not implemented (eval only).
    x = x_ref[...].astype(jnp.bfloat16)

    h = jnp.dot(x, w1_ref[...], preferred_element_type=jnp.float32) + b1_ref[...]
    h = jnp.maximum(h, 0.0)

    h = jnp.dot(h.astype(jnp.bfloat16), w2_ref[...],
                preferred_element_type=jnp.float32) + b2_ref[...]
    h = jnp.maximum(h, 0.0)

    h = jnp.dot(h.astype(jnp.bfloat16), w3_ref[...],
                preferred_element_type=jnp.float32) + b3_ref[...]
    h = jnp.maximum(h, 0.0)

    out = jnp.dot(h.astype(jnp.bfloat16), w4_ref[...],
                  preferred_element_type=jnp.float32) + b4_ref[...]
    out_ref[...] = out.astype(out_ref.dtype)


@functools.partial(jax.jit, static_argnames=("tile_m",))
def deepnn_forward(x, params, *, tile_m=2048):
    """x: (batch, input_size) f32; params: flat tuple of 20 arrays."""
    (w1, b1, g1, be1, m1, v1,
     w2, b2, g2, be2, m2, v2,
     w3, b3, g3, be3, m3, v3,
     w4, b4) = params

    # Fold BatchNorm (eval) into the Linear layers (biases stay f32).
    w1f, b1f = _fold_bn(w1, b1, g1, be1, m1, v1)
    w2f, b2f = _fold_bn(w2, b2, g2, be2, m2, v2)
    w3f, b3f = _fold_bn(w3, b3, g3, be3, m3, v3)

    B, in_features = x.shape
    out_features = w4.shape[-1]

    # Batch-aware row tile; ragged final block is masked by Pallas (no pad copy).
    TM = _choose_tm(B, tile_m)
    grid = (pl.cdiv(B, TM),)

    # bf16 weights for the MXU (accumulation stays f32 inside the kernel).
    weights = [w.astype(jnp.bfloat16) for w in (w1f, w2f, w3f, w4)]
    biases = [b1f, b2f, b3f, b4]

    const_map = lambda i: (0, 0)
    in_specs = [pl.BlockSpec((TM, in_features), lambda i: (i, 0))]
    for w, b in zip(weights, biases):
        in_specs.append(pl.BlockSpec(w.shape, const_map))   # resident weights
        in_specs.append(pl.BlockSpec(b.shape, const_map))   # resident biases

    flops = 2 * B * sum(w.shape[0] * w.shape[1] for w in weights)
    bytes_accessed = (x.size * x.dtype.itemsize
                      + B * out_features * 4
                      + sum(w.size * 2 for w in weights)
                      + sum(b.size * 4 for b in biases))

    out = pl.pallas_call(
        deepnn_kernel,
        out_shape=jax.ShapeDtypeStruct((B, out_features), jnp.float32),
        grid=grid,
        in_specs=in_specs,
        out_specs=pl.BlockSpec((TM, out_features), lambda i: (i, 0)),
        compiler_params=pltpu.CompilerParams(
            dimension_semantics=("parallel",),
            vmem_limit_bytes=32 * 1024 * 1024,
        ),
        cost_estimate=pl.CostEstimate(
            flops=flops, transcendentals=0, bytes_accessed=bytes_accessed),
    )(x,
      weights[0], biases[0],
      weights[1], biases[1],
      weights[2], biases[2],
      weights[3], biases[3])

    return out


def init_params(key, input_size, output_size):
    """Deterministic synthetic init mirroring DeepNN.__init__ shapes."""
    dims = [(input_size, 256), (256, 128), (128, 64), (64, output_size)]
    keys = jax.random.split(key, 16)
    ki = iter(range(16))
    params = []
    for li, (fan_in, fan_out) in enumerate(dims):
        bound = 1.0 / jnp.sqrt(jnp.float32(fan_in))
        w = jax.random.uniform(keys[next(ki)], (fan_in, fan_out),
                               jnp.float32, -bound, bound)
        b = jax.random.uniform(keys[next(ki)], (1, fan_out),
                               jnp.float32, -bound, bound)
        params += [w, b]
        if li < 3:  # BatchNorm1d after the first three Linear layers
            gamma = 1.0 + 0.1 * jax.random.normal(keys[next(ki)], (1, fan_out),
                                                  jnp.float32)
            beta = 0.1 * jax.random.normal(keys[next(ki)], (1, fan_out),
                                           jnp.float32)
            run_mean = jnp.zeros((1, fan_out), jnp.float32)
            run_var = jnp.ones((1, fan_out), jnp.float32)
            params += [gamma, beta, run_mean, run_var]
    return tuple(params)


def reference_forward(x, params):
    """Pure-JAX f32 reference (eval-mode semantics)."""
    (w1, b1, g1, be1, m1, v1,
     w2, b2, g2, be2, m2, v2,
     w3, b3, g3, be3, m3, v3,
     w4, b4) = params
    h = x @ w1 + b1
    h = jnp.maximum((h - m1) * g1 / jnp.sqrt(v1 + BN_EPS) + be1, 0.0)
    h = h @ w2 + b2
    h = jnp.maximum((h - m2) * g2 / jnp.sqrt(v2 + BN_EPS) + be2, 0.0)
    h = h @ w3 + b3
    h = jnp.maximum((h - m3) * g3 / jnp.sqrt(v3 + BN_EPS) + be3, 0.0)
    return h @ w4 + b4


if __name__ == "__main__":
    input_size = 32
    output_size = 8

    key = jax.random.PRNGKey(0)
    kx, kp = jax.random.split(key)
    params = init_params(kp, input_size, output_size)

    # Small tile here so the batch grid actually has multiple steps
    # (32 rows / TM=8 -> grid of 4).  Production batches use the default 2048.
    for batch in (32, 27):   # 27 exercises the masked ragged final block
        x = jax.random.normal(kx, (batch, input_size), jnp.float32)
        out = deepnn_forward(x, params, tile_m=8)
        out = jax.block_until_ready(out)

        ref = reference_forward(x, params)
        assert out.shape == (batch, output_size), out.shape
        # bf16 MXU inputs (f32 accumulation) => compare with loosened tolerance.
        max_err = float(jnp.max(jnp.abs(out - ref)))
        assert max_err < 3e-2, f"batch={batch}: mismatch vs reference, max abs err={max_err}"

    print("KERNEL_OK")
</pallas_src>

<mosaic_0001>
module attributes {stable_mosaic.version = 11 : i64} {
  func.func @deepnn_kernel(%arg0: i32, %arg1: memref<8x32xf32, #tpu.memory_space<vmem>>, %arg2: memref<32x256xbf16, #tpu.memory_space<vmem>>, %arg3: memref<1x256xf32, #tpu.memory_space<vmem>>, %arg4: memref<256x128xbf16, #tpu.memory_space<vmem>>, %arg5: memref<1x128xf32, #tpu.memory_space<vmem>>, %arg6: memref<128x64xbf16, #tpu.memory_space<vmem>>, %arg7: memref<1x64xf32, #tpu.memory_space<vmem>>, %arg8: memref<64x8xbf16, #tpu.memory_space<vmem>>, %arg9: memref<1x8xf32, #tpu.memory_space<vmem>>, %arg10: memref<8x8xf32, #tpu.memory_space<vmem>>) attributes {dimension_semantics = [#tpu.dimension_semantics<parallel>], iteration_bounds = array<i64: 4>, scalar_prefetch = 0 : i64, scratch_operands = 0 : i64, tpu.core_type = #tpu.core_type<tc>, window_params = [{transform_indices = @transform_0, window_bounds = array<i64: 8, 32>}, {pipeline_mode = #tpu.pipeline_mode<synchronous>, transform_indices = @transform_1, window_bounds = array<i64: 32, 256>}, {pipeline_mode = #tpu.pipeline_mode<synchronous>, transform_indices = @transform_2, window_bounds = array<i64: 1, 256>}, {pipeline_mode = #tpu.pipeline_mode<synchronous>, transform_indices = @transform_3, window_bounds = array<i64: 256, 128>}, {pipeline_mode = #tpu.pipeline_mode<synchronous>, transform_indices = @transform_4, window_bounds = array<i64: 1, 128>}, {pipeline_mode = #tpu.pipeline_mode<synchronous>, transform_indices = @transform_5, window_bounds = array<i64: 128, 64>}, {pipeline_mode = #tpu.pipeline_mode<synchronous>, transform_indices = @transform_6, window_bounds = array<i64: 1, 64>}, {pipeline_mode = #tpu.pipeline_mode<synchronous>, transform_indices = @transform_7, window_bounds = array<i64: 64, 8>}, {pipeline_mode = #tpu.pipeline_mode<synchronous>, transform_indices = @transform_8, window_bounds = array<i64: 1, 8>}, {transform_indices = @transform_9, window_bounds = array<i64: 8, 8>}]} {
    %c0 = arith.constant 0 : index
    %c0_0 = arith.constant 0 : index
    %0 = vector.load %arg1[%c0, %c0_0] : memref<8x32xf32, #tpu.memory_space<vmem>>, vector<8x32xf32>
    %1 = arith.truncf %0 : vector<8x32xf32> to vector<8x32xbf16>
    %c0_1 = arith.constant 0 : index
    %c0_2 = arith.constant 0 : index
    %2 = vector.load %arg2[%c0_1, %c0_2] : memref<32x256xbf16, #tpu.memory_space<vmem>>, vector<32x256xbf16>
    %cst = arith.constant dense<0.000000e+00> : vector<8x256xf32>
    %3 = tpu.matmul %1, %2, %cst {dimension_numbers = #tpu.dot_dimension_numbers<[1], [0], [0], [1], [0, 0, 1, 1], [], []>} : vector<8x32xbf16>, vector<32x256xbf16>, vector<8x256xf32> -> vector<8x256xf32>
    %c0_3 = arith.constant 0 : index
    %c0_4 = arith.constant 0 : index
    %4 = vector.load %arg3[%c0_3, %c0_4] : memref<1x256xf32, #tpu.memory_space<vmem>>, vector<1x256xf32>
    %5 = vector.broadcast %4 : vector<1x256xf32> to vector<8x256xf32>
    %6 = arith.addf %3, %5 : vector<8x256xf32>
    %cst_5 = arith.constant 0.000000e+00 : f32
    %7 = vector.broadcast %cst_5 : f32 to vector<8x256xf32>
    %8 = arith.maximumf %6, %7 : vector<8x256xf32>
    %9 = arith.truncf %8 : vector<8x256xf32> to vector<8x256xbf16>
    %c0_6 = arith.constant 0 : index
    %c0_7 = arith.constant 0 : index
    %10 = vector.load %arg4[%c0_6, %c0_7] : memref<256x128xbf16, #tpu.memory_space<vmem>>, vector<256x128xbf16>
    %cst_8 = arith.constant dense<0.000000e+00> : vector<8x128xf32>
    %11 = tpu.matmul %9, %10, %cst_8 {dimension_numbers = #tpu.dot_dimension_numbers<[1], [0], [0], [1], [0, 0, 1, 1], [], []>} : vector<8x256xbf16>, vector<256x128xbf16>, vector<8x128xf32> -> vector<8x128xf32>
    %c0_9 = arith.constant 0 : index
    %c0_10 = arith.constant 0 : index
    %12 = vector.load %arg5[%c0_9, %c0_10] : memref<1x128xf32, #tpu.memory_space<vmem>>, vector<1x128xf32>
    %13 = vector.broadcast %12 : vector<1x128xf32> to vector<8x128xf32>
    %14 = arith.addf %11, %13 : vector<8x128xf32>
    %cst_11 = arith.constant 0.000000e+00 : f32
    %15 = vector.broadcast %cst_11 : f32 to vector<8x128xf32>
    %16 = arith.maximumf %14, %15 : vector<8x128xf32>
    %17 = arith.truncf %16 : vector<8x128xf32> to vector<8x128xbf16>
    %c0_12 = arith.constant 0 : index
    %c0_13 = arith.constant 0 : index
    %18 = vector.load %arg6[%c0_12, %c0_13] : memref<128x64xbf16, #tpu.memory_space<vmem>>, vector<128x64xbf16>
    %cst_14 = arith.constant dense<0.000000e+00> : vector<8x64xf32>
    %19 = tpu.matmul %17, %18, %cst_14 {dimension_numbers = #tpu.dot_dimension_numbers<[1], [0], [0], [1], [0, 0, 1, 1], [], []>} : vector<8x128xbf16>, vector<128x64xbf16>, vector<8x64xf32> -> vector<8x64xf32>
    %c0_15 = arith.constant 0 : index
    %c0_16 = arith.constant 0 : index
    %20 = vector.load %arg7[%c0_15, %c0_16] : memref<1x64xf32, #tpu.memory_space<vmem>>, vector<1x64xf32>
    %21 = vector.broadcast %20 : vector<1x64xf32> to vector<8x64xf32>
    %22 = arith.addf %19, %21 : vector<8x64xf32>
    %cst_17 = arith.constant 0.000000e+00 : f32
    %23 = vector.broadcast %cst_17 : f32 to vector<8x64xf32>
    %24 = arith.maximumf %22, %23 : vector<8x64xf32>
    %25 = arith.truncf %24 : vector<8x64xf32> to vector<8x64xbf16>
    %c0_18 = arith.constant 0 : index
    %c0_19 = arith.constant 0 : index
    %26 = vector.load %arg8[%c0_18, %c0_19] : memref<64x8xbf16, #tpu.memory_space<vmem>>, vector<64x8xbf16>
    %cst_20 = arith.constant dense<0.000000e+00> : vector<8x8xf32>
    %27 = tpu.matmul %25, %26, %cst_20 {dimension_numbers = #tpu.dot_dimension_numbers<[1], [0], [0], [1], [0, 0, 1, 1], [], []>} : vector<8x64xbf16>, vector<64x8xbf16>, vector<8x8xf32> -> vector<8x8xf32>
    %c0_21 = arith.constant 0 : index
    %c0_22 = arith.constant 0 : index
    %28 = vector.load %arg9[%c0_21, %c0_22] : memref<1x8xf32, #tpu.memory_space<vmem>>, vector<1x8xf32>
    %29 = vector.broadcast %28 : vector<1x8xf32> to vector<8x8xf32>
    %30 = arith.addf %27, %29 : vector<8x8xf32>
    %c0_23 = arith.constant 0 : index
    %c0_24 = arith.constant 0 : index
    %31 = vector.load %arg10[%c0_23, %c0_24] : memref<8x8xf32, #tpu.memory_space<vmem>>, vector<8x8xf32>
    tpu.vector_store %arg10[%c0_23, %c0_24], %30 {strides = array<i32>} : memref<8x8xf32, #tpu.memory_space<vmem>>, vector<8x8xf32>,
    return
  }
  func.func @transform_0(%arg0: i32) -> (i32, i32) {
    %c0_i32 = arith.constant 0 : i32
    %c0_i32_0 = arith.constant 0 : i32
    return %arg0, %c0_i32 : i32, i32
  }
  func.func @transform_1(%arg0: i32) -> (i32, i32) {
    %c0_i32 = arith.constant 0 : i32
    %c0_i32_0 = arith.constant 0 : i32
    %c0_i32_1 = arith.constant 0 : i32
    return %c0_i32, %c0_i32_0 : i32, i32
  }
  func.func @transform_2(%arg0: i32) -> (i32, i32) {
    %c0_i32 = arith.constant 0 : i32
    %c0_i32_0 = arith.constant 0 : i32
    %c0_i32_1 = arith.constant 0 : i32
    return %c0_i32, %c0_i32_0 : i32, i32
  }
  func.func @transform_3(%arg0: i32) -> (i32, i32) {
    %c0_i32 = arith.constant 0 : i32
    %c0_i32_0 = arith.constant 0 : i32
    %c0_i32_1 = arith.constant 0 : i32
    return %c0_i32, %c0_i32_0 : i32, i32
  }
  func.func @transform_4(%arg0: i32) -> (i32, i32) {
    %c0_i32 = arith.constant 0 : i32
    %c0_i32_0 = arith.constant 0 : i32
    %c0_i32_1 = arith.constant 0 : i32
    return %c0_i32, %c0_i32_0 : i32, i32
  }
  func.func @transform_5(%arg0: i32) -> (i32, i32) {
    %c0_i32 = arith.constant 0 : i32
    %c0_i32_0 = arith.constant 0 : i32
    %c0_i32_1 = arith.constant 0 : i32
    return %c0_i32, %c0_i32_0 : i32, i32
  }
  func.func @transform_6(%arg0: i32) -> (i32, i32) {
    %c0_i32 = arith.constant 0 : i32
    %c0_i32_0 = arith.constant 0 : i32
    %c0_i32_1 = arith.constant 0 : i32
    return %c0_i32, %c0_i32_0 : i32, i32
  }
  func.func @transform_7(%arg0: i32) -> (i32, i32) {
    %c0_i32 = arith.constant 0 : i32
    %c0_i32_0 = arith.constant 0 : i32
    %c0_i32_1 = arith.constant 0 : i32
    return %c0_i32, %c0_i32_0 : i32, i32
  }
  func.func @transform_8(%arg0: i32) -> (i32, i32) {
    %c0_i32 = arith.constant 0 : i32
    %c0_i32_0 = arith.constant 0 : i32
    %c0_i32_1 = arith.constant 0 : i32
    return %c0_i32, %c0_i32_0 : i32, i32
  }
  func.func @transform_9(%arg0: i32) -> (i32, i32) {
    %c0_i32 = arith.constant 0 : i32
    %c0_i32_0 = arith.constant 0 : i32
    return %arg0, %c0_i32 : i32, i32
  }
}

</mosaic_0001>

<bundles_post_ra>
// kernel: deepnn_forward.1
= control target key start
LH: loop header
LB: loop body
LE: loop exit
PB: predicated region body
PF: predicated region fallthrough
CT: control target
= control target key end

     0   :  { %s1064_s30 = smov 0   ;;  %s1210_s0 = inlined_call_operand.vmem [shape: f32[32,32], index: 0, kind: input, shape index: {}]   ;;  %s1211_s1 = inlined_call_operand.vmem [shape: bf16[32,256], index: 1, kind: input, shape index: {}]   ;;  %s1212_s2 = inlined_call_operand.vmem [shape: f32[1,256], index: 2, kind: input, shape index: {}]   ;;  %s1213_s3 = inlined_call_operand.vmem [shape: bf16[256,128], index: 3, kind: input, shape index: {}]   ;;  %s1214_s4 = inlined_call_operand.vmem [shape: f32[1,128], index: 4, kind: input, shape index: {}]   ;;  %s1215_s5 = inlined_call_operand.vmem [shape: bf16[128,64], index: 5, kind: input, shape index: {}]   ;;  %s1216_s6 = inlined_call_operand.vmem [shape: f32[1,64], index: 6, kind: input, shape index: {}]   ;;  %s1217_s7 = inlined_call_operand.vmem [shape: bf16[64,8], index: 7, kind: input, shape index: {}]   ;;  %s1218_s8 = inlined_call_operand.vmem [shape: f32[1,8], index: 8, kind: input, shape index: {}]   ;;  %s1219_s9 = inlined_call_operand.vmem [shape: f32[32,8], index: 9, kind: output, shape index: {}]  }
   0x1 LB: > { %s844_s10 = sadd.s32 4294967295, %s1009_s30   ;;  %p848_p0 = scmp.ge.s32.totalorder %s1009_s30, 1  ;;  %s1009_s30 = sphi %s1064_s30, %s19_s30  }
   0x2   : > { %p286_p1 = scmp.lt.s32.totalorder %s1009_s30, 5 }
   0x4   : > { %p287_p2 = pnand %p848_p0, %p286_p1 }
   0x5   : > { %v969_v0 = vld [vmem:[%s1211_s1 + $0x4] ss:$8 sps:$4 sm:$0xff] (!%p287_p2)   ;;  %p320_p3 = scmp.lt.s32.totalorder (!%p287_p2), %s844_s10, 3  ;;  %v971_v1 = vld [vmem:[%s1211_s1] ss:$8 sps:$4 sm:$0xff] (!%p287_p2)   ;;  %v1011_v2 = vmov (!%p287_p2), 0   ;;  %v337_v30 = vlaneseq (!%p287_p2) }
   0x6   : > { %290 = sbr.rel (%p287_p2) target bundleno = 893 (0x37d), region = 56  ;;  %403 = vmatprep.mubr.bf16.mxu0 (!%p287_p2), %v1011_v2  ;;  %371 = vmatprep.subr.bf16.mxu0 (!%p287_p2), %v969_v0  ;;  %v972_v3 = vld [vmem:[%s1211_s1 + $0x14] ss:$8 sps:$4 sm:$0xff] (!%p287_p2)   ;;  %v974_v4 = vld [vmem:[%s1211_s1 + $0x10] ss:$8 sps:$4 sm:$0xff] (!%p287_p2)   ;;  %v975_v5 = vld [vmem:[%s1213_s3 + $0x40] sm:$0xff] (!%p287_p2)  }
   0x7   : > { %372 = vmatpush1.bf16.msra.mxu0 (!%p287_p2), %v971_v1  ;;  %890 = vmatprep.subr.bf16.mxu1 (!%p287_p2), %v975_v5  ;;  %v976_v6 = vld [vmem:[%s1213_s3] sm:$0xff] (!%p287_p2)   ;;  %v977_v7 = vld [vmem:[%s1213_s3 + $0x48] sm:$0xff] (!%p287_p2)   ;;  %vm367_vm0 = vcmask (!%p287_p2), 261120   ;;  %v979_v11 = vld [vmem:[%s1213_s3 + $0x50] sm:$0xff] (!%p287_p2)   ;;  %v1012_v24 = vmov (!%p287_p2), 0.0   ;;  %v338_v31 = vshrl.u32 (!%p287_p2), %v337_v30, 7 }
   0x8   : > { %373 = vmatprep.subr.bf16.mxu0 (!%p287_p2), %v972_v3  ;;  %891 = vmatpush3.bf16.msra.mxu1 (!%p287_p2), %v976_v6  ;;  %v978_v9 = vld [vmem:[%s1213_s3 + $0x8] sm:$0xff] (!%p287_p2)   ;;  %v980_v12 = vld [vmem:[%s1213_s3 + $0x10] sm:$0xff] (!%p287_p2)   ;;  %v981_v13 = vld [vmem:[%s1213_s3 + $0x58] sm:$0xff] (!%p287_p2)   ;;  %vm1013_vm1 = vmmov (!%p287_p2), 0   ;;  %vm745_vm2 = vcmask (!%p287_p2), 523264   ;;  %vm789_vm3 = vcmask (!%p287_p2), 64512  }
   0x9   : > { %892 = vmatprep.subr.bf16.mxu1 (!%p287_p2), %v977_v7  ;;  %v982_v14 = vld [vmem:[%s1213_s3 + $0x18] sm:$0xff] (!%p287_p2)   ;;  %v983_v15 = vld [vmem:[%s1213_s3 + $0x60] sm:$0xff] (!%p287_p2)   ;;  %v985_v17 = vld [vmem:[%s1213_s3 + $0x68] sm:$0xff] (!%p287_p2)   ;;  %v339_v32 = vsub.s32 (!%p287_p2), 0, %v338_v31  ;;  %v343_v34 = vsub.s32 (!%p287_p2), 1, %v338_v31 }
   0xa   : > { %v984_v16 = vld [vmem:[%s1213_s3 + $0x20] sm:$0xff] (!%p287_p2)   ;;  %v986_v18 = vld [vmem:[%s1213_s3 + $0x28] sm:$0xff] (!%p287_p2)   ;;  %v987_v19 = vld [vmem:[%s1213_s3 + $0x70] sm:$0xff] (!%p287_p2)  }
   0xb   : > { %374 = vmatpush1.bf16.msra.mxu0 (!%p287_p2), %v974_v4  ;;  %v988_v20 = vld [vmem:[%s1213_s3 + $0x30] sm:$0xff] (!%p287_p2)   ;;  %v989_v21 = vld [vmem:[%s1213_s3 + $0x78] sm:$0xff] (!%p287_p2)   ;;  %v991_v23 = vld [vmem:[%s1215_s5] sm:$0xff] (!%p287_p2)  }
   0xc   : > { %893 = vmatpush3.bf16.msra.mxu1 (!%p287_p2), %v978_v9  ;;  %v990_v22 = vld [vmem:[%s1213_s3 + $0x38] sm:$0xff] (!%p287_p2)   ;;  %926 = vmatprep.subr.bf16.mxu0 (!%p287_p2), %v1012_v24  ;;  %v992_v25 = vld [vmem:[%s1215_s5 + $0x8] sm:$0xff] (!%p287_p2)   ;;  %v993_v26 = vld [vmem:[%s1215_s5 + $0x10] sm:$0xff] (!%p287_p2)  }
   0xd   : > { %s1221_s10 = smov (!%p320_p3, %s844_s10), 3  ;;  %894 = vmatprep.subr.bf16.mxu1 %v979_v11  ;;  %v994_v27 = vld [vmem:[%s1215_s5 + $0x18] sm:$0xff]   ;;  %v995_v28 = vld [vmem:[%s1215_s5 + $0x20] sm:$0xff]   ;;  %v996_v29 = vld [vmem:[%s1215_s5 + $0x28] sm:$0xff]  }
   0xe   : > { %s849_s21 = sshll.u32 %s1221_s10, 3  ;;  %v335_v33 = vld [vmem:[%s1212_s2] sm:$0x3]  ;;  %v997_v47 = vld [vmem:[%s1215_s5 + $0x30] sm:$0xff]   ;;  %v998_v48 = vld [vmem:[%s1215_s5 + $0x38] sm:$0xff]  }
   0xf   : > { %s323_s26 = scalar_lea.vmem %s1210_s0, %s849_s21  ;;  %v340_v35 = vrot.slane %v335_v33, %v339_v32  ;;  %v344_v36 = vrot.slane %v335_v33, %v343_v34  ;;  %v999_v49 = vld [vmem:[%s1217_s7] sm:$0xff]   ;;  %v1000_v50 = vld [vmem:[%s1217_s7 + $0x8] sm:$0xff]   ;;  %v1001_v60 = vld [vmem:[%s1217_s7 + $0x10] sm:$0xff]   ;;  %s327_s16 = scalar_lea.vmem %s1219_s9, %s849_s21 }
  0x10   : > { %v329_v8 = vld [vmem:[%s323_s26] sm:$0xff]  ;;  %895 = vmatpush3.bf16.msra.mxu1 %v980_v12  ;;  %v1002_v61 = vld [vmem:[%s1217_s7 + $0x18] sm:$0xff]  }
  0x11   : > { %v330_v10 = vpack.c.bf16 %v329_v8, %v329_v8  ;;  %896 = vmatprep.subr.bf16.mxu1 %v981_v13  ;;  %v856_v52 = vld [vmem:[%s1214_s4] ss:$0 sm:$0xff] }
  0x12   : > { %v873_v62 = vld [vmem:[%s1216_s6] ss:$0 sm:$0xff] }
  0x13   : > { %855 = vmatmul.mubr.msk.bf16.vlgmr.msra.gmra.mrb[0].mxu0 %vm367_vm0, %v330_v10  ;;  %v882_v6 = vld [vmem:[%s1218_s8] ss:$0 sm:$0xff] }
  0x14   : > { %897 = vmatpush3.bf16.msra.mxu1 %v982_v14  ;;  %927 = vmatpush3.bf16.msra.mxu0 %v991_v23 }
  0x15   : > { %898 = vmatprep.subr.bf16.mxu1 %v983_v15  ;;  %928 = vmatprep.subr.bf16.mxu0 %v1012_v24 }
  0x16   : > { %942 = vmatprep.mubr.msk.bf16.mxu0 %vm1013_vm1, %v1012_v24 }
  0x18   : > { %899 = vmatpush3.bf16.msra.mxu1 %v984_v16  ;;  %929 = vmatpush3.bf16.msra.mxu0 %v992_v25 }
  0x19   : > { %900 = vmatprep.subr.bf16.mxu1 %v985_v17  ;;  %930 = vmatprep.subr.bf16.mxu0 %v1012_v24 }
  0x1c   : > { %901 = vmatpush3.bf16.msra.mxu1 %v986_v18  ;;  %931 = vmatpush3.bf16.msra.mxu0 %v993_v26 }
  0x1d   : > { %902 = vmatprep.subr.bf16.mxu1 %v987_v19  ;;  %932 = vmatprep.subr.bf16.mxu0 %v1012_v24 }
  0x20   : > { %903 = vmatpush3.bf16.msra.mxu1 %v988_v20  ;;  %933 = vmatpush3.bf16.msra.mxu0 %v994_v27 }
  0x21   : > { %904 = vmatprep.subr.bf16.mxu1 %v989_v21  ;;  %934 = vmatprep.subr.bf16.mxu0 %v1012_v24 }
  0x24   : > { %905 = vmatpush3.bf16.msra.mxu1 %v990_v22  ;;  %935 = vmatpush3.bf16.msra.mxu0 %v995_v28 }
  0x25   : > { %946 = vmatprep.subr.bf16.mxu1 %v1012_v24  ;;  %936 = vmatprep.subr.bf16.mxu0 %v1012_v24 }
  0x28   : > { %937 = vmatpush3.bf16.msra.mxu0 %v996_v29 }
  0x29   : > { %938 = vmatprep.subr.bf16.mxu0 %v1012_v24 }
  0x2c   : > { %939 = vmatpush3.bf16.msra.mxu0 %v997_v47 }
  0x2d   : > { %940 = vmatprep.subr.bf16.mxu0 %v1012_v24 }
  0x30   : > { %941 = vmatpush3.bf16.msra.mxu0 %v998_v48 }
  0xe6   : > { %v405_v37 = vpop.f32.mrb[0].mxu0 }
  0xe7   : > { %v406_v38 = vadd.f32 %v405_v37, %v340_v35  ;;  %v407_v39 = vpop.f32.mrb[1].mxu0 }
  0xe8   : > { %v408_v40 = vadd.f32 %v407_v39, %v344_v36  ;;  %v409_v41 = vpop.f32.mrb[2].mxu0 }
  0xe9   : > { %v412_v42 = vmax.f32 %v406_v38, 0.0  ;;  %v410_v43 = vpop.f32.mrb[3].mxu0 }
  0xea   : > { %v413_v44 = vmax.f32 %v408_v40, 0.0 }
  0xeb   : > { %v414_v46 = vpack.c.bf16 %v412_v42, %v412_v42 }
  0xec   : > { %v415_v45 = vpack.c.bf16 %v413_v44, %v413_v44 }
  0xee   : > { %583 = vmatprep.mubr.bf16.mxu1 %v415_v45 }
  0xef   : > { %584 = vmatmul.mubr.bf16.vlgmr.msra.gmra.mrb[0].mxu1 %v414_v46 }
  0xf0   : > { %954 = vmatprep.mubr.msk.bf16.mxu1 %vm1013_vm1, %v1012_v24  ;;  %947 = vmatpush3.bf16.msra.mxu1 %v999_v49 }
  0xf1   : > { %948 = vmatprep.subr.bf16.mxu1 %v1012_v24 }
  0xf4   : > { %949 = vmatpush3.bf16.msra.mxu1 %v1000_v50 }
  0xf5   : > { %950 = vmatprep.subr.bf16.mxu1 %v1012_v24 }
  0xf8   : > { %951 = vmatpush3.bf16.msra.mxu1 %v1001_v60 }
  0xf9   : > { %952 = vmatprep.subr.bf16.mxu1 %v1012_v24 }
  0xfc   : > { %953 = vmatpush3.bf16.msra.mxu1 %v1002_v61 }
 0x1c2   : > { %v906_v51 = vpop.f32.mrb[0].mxu1 }
 0x1c3   : > { %v907_v53 = vpop.f32.mrb[1].mxu1 }
 0x1c4   : > { %v908_v54 = vadd.f32 %v907_v53, %v906_v51  ;;  %v909_v55 = vpop.f32.mrb[2].mxu1 }
 0x1c5   : > { %v910_v56 = vpop.f32.mrb[3].mxu1 }
 0x1c6   : > { %v586_v57 = vadd.f32 %v908_v54, %v856_v52 }
 0x1c8   : > { %v591_v58 = vmax.f32 %v586_v57, 0.0 }
 0x1ca   : > { %v592_v59 = vpack.c.bf16 %v591_v58, %v591_v58 }
 0x1cc   : > { %943 = vmatmul.mubr.bf16.vlgmr.msra.gmra.mrb[4].mxu0 %v592_v59 }
 0x29f   : > { %v698_v63 = vpop.f32.mrb[4].mxu0 }
 0x2a0   : > { %v699_v0 = vadd.f32 %v873_v62, %v698_v63  ;;  %v944_v1 = vpop.f32.mrb[5].mxu0 }
 0x2a1   : > { %v701_v2 = vpop.f32.mrb[6].mxu0 }
 0x2a2   : > { %v704_v3 = vmax.f32 %v699_v0, 0.0  ;;  %v945_v4 = vpop.f32.mrb[7].mxu0 }
 0x2a4   : > { %v705_v5 = vpack.c.bf16 %v704_v3, %v704_v3 }
 0x2a6   : > { %955 = vmatmul.mubr.msk.bf16.vlgmr.msra.gmra.mrb[4].mxu1 %vm745_vm2, %v705_v5 }
 0x379   : > { %v783_v7 = vpop.f32.mrb[4].mxu1 }
 0x37a   : > { %v784_v8 = vadd.f32 %v882_v6, %v783_v7  ;;  %v956_v9 = vpop.f32.mrb[5].mxu1 }
 0x37b   : > { %v786_v10 = vpop.f32.mrb[6].mxu1 }
 0x37c   : > { %790 = vst.msk [vmem:[%s327_s16] sm:$0xff] %vm789_vm3, %v784_v8  ;;  %v957_v11 = vpop.f32.mrb[7].mxu1 }
 0x37d PF: > { %s19_s30 = sadd.s32 1, %s1009_s30  }
 0x37e   : > { %p16_p4 = scmp.ge.s32.totalorder %s19_s30, 6  }
 0x380   :  { %18 = sbr.rel (!%p16_p4) target bundleno = 1 (0x1), region = 86 }

</bundles_post_ra>
